<compile_context>
chip_gen: v5e
topology: v5e:2x2
jax: 0.10.0
libtpu: 0.0.40
codegen_flags: <defaults>
</compile_context>

<pallas_src>
import math

import jax
import jax.numpy as jnp
from jax.experimental import pallas as pl
from jax.experimental.pallas import tpu as pltpu

LANE = 128


def _round_up(v, m):
    return (v + m - 1) // m * m


# ---------------------------------------------------------------------------
# Pass 1: SAGEConv1 (mean aggr) -> L2-normalize -> ReLU
# ---------------------------------------------------------------------------
def conv1_kernel(counts_ref, xk_ref, inv_deg_ref, xrow_ref,
                 wl_ref, wr_ref, b_ref, h_ref, acc_ref):
    k = pl.program_id(1)

    @pl.when(k == 0)
    def _():
        acc_ref[...] = jnp.zeros_like(acc_ref)

    # (counts @ x) accumulated over K tiles on the MXU (bf16 in, f32 acc).
    acc_ref[...] += jnp.dot(counts_ref[...], xk_ref[...],
                            preferred_element_type=jnp.float32)

    @pl.when(k == pl.num_programs(1) - 1)
    def _():
        agg = (acc_ref[...] * inv_deg_ref[...]).astype(jnp.bfloat16)  # exact mean
        # Fused projection as two dots summed in f32 (no concat materialization).
        h = jnp.dot(agg, wl_ref[...], preferred_element_type=jnp.float32)
        h += jnp.dot(xrow_ref[...], wr_ref[...],
                     preferred_element_type=jnp.float32)
        h += b_ref[...]
        # F.normalize(p=2, dim=-1, eps=1e-12) via rsqrt on clamped sumsq.
        sumsq = jnp.sum(h * h, axis=-1, keepdims=True)
        h = h * jax.lax.rsqrt(jnp.maximum(sumsq, 1e-24))
        h_ref[...] = jnp.maximum(h, 0.0)                              # ReLU


# ---------------------------------------------------------------------------
# Pass 2: SAGEConv2 (mean aggr, on BN-pre-applied bf16 h) -> L2-normalize
# (accumulates directly into the resident output block; no scratch)
# ---------------------------------------------------------------------------
def conv2_kernel(counts_ref, hk_ref, inv_deg_ref, hrow_ref,
                 wl_ref, wr_ref, b_ref, o_ref):
    k = pl.program_id(1)

    @pl.when(k == 0)
    def _():
        o_ref[...] = jnp.zeros_like(o_ref)

    o_ref[...] += jnp.dot(counts_ref[...], hk_ref[...],
                          preferred_element_type=jnp.float32)

    @pl.when(k == pl.num_programs(1) - 1)
    def _():
        agg = (o_ref[...] * inv_deg_ref[...]).astype(jnp.bfloat16)
        h2 = jnp.dot(agg, wl_ref[...], preferred_element_type=jnp.float32)
        h2 += jnp.dot(hrow_ref[...], wr_ref[...],
                      preferred_element_type=jnp.float32)
        h2 += b_ref[...]
        sumsq = jnp.sum(h2 * h2, axis=-1, keepdims=True)
        o_ref[...] = h2 * jax.lax.rsqrt(jnp.maximum(sumsq, 1e-24))


# ---------------------------------------------------------------------------
# Wrapper
# ---------------------------------------------------------------------------
def sage_forward(x, edge_index, params, *, tm=512, tk=512):
    """x: [N, nfeat] f32; edge_index: [2, E] int32 (row 0 = src j, row 1 = dst i)."""
    n, nfeat = x.shape
    nhid = params["w1l"].shape[1]

    f_pad = _round_up(nfeat, LANE)
    h_pad = _round_up(nhid, LANE)

    # --- tile geometry ------------------------------------------------------
    # tm / tk are decoupled: tk sets the counts-tile width / MXU contraction
    # depth, tm sets how often x/h are re-streamed and the finalize frequency.
    tm = max(LANE, _round_up(tm, LANE))
    tk = max(LANE, _round_up(tk, LANE))
    n128 = _round_up(n, LANE)
    tm = min(tm, n128)
    tk = min(tk, n128)

    # Per-generation VMEM budget: 48 MiB on v7x (64 MiB physical), 64 MiB on
    # v5e/v6e (128 MiB physical).  Auto-shrink tiles if the estimate overflows.
    try:
        vmem_cap = pltpu.get_tpu_info().vmem_capacity_bytes
    except Exception:
        vmem_cap = 128 * 1024 * 1024
    vmem_budget = min(64 * 1024 * 1024, (vmem_cap * 3) // 4)

    def _est_vmem(tm_, tk_):
        w = max(f_pad, h_pad)
        return (2 * tm_ * tk_ * 2          # counts tile, double-buffered bf16
                + 2 * tk_ * w * 2          # x/h K block, double-buffered bf16
                + 2 * tm_ * w * 2          # x/h row block, double-buffered bf16
                + 4 * w * h_pad * 2        # two weight halves x 2 buffers
                + tm_ * w * 4              # f32 accumulator (pass 1)
                + 2 * tm_ * h_pad * 4)     # f32 output block

    while _est_vmem(tm, tk) > vmem_budget and tk > LANE:
        tk = max(LANE, (tk // 2) // LANE * LANE)
    while _est_vmem(tm, tk) > vmem_budget and tm > LANE:
        tm = max(LANE, (tm // 2) // LANE * LANE)

    n_pad = _round_up(n, math.lcm(tm, tk))
    grid = (n_pad // tm, n_pad // tk)

    # --- graph operands -------------------------------------------------------
    src, dst = edge_index[0], edge_index[1]
    # Edge counts scattered straight into bf16 (exact for multiplicity < 256);
    # degrees from the edge list in O(E), not a dense O(N^2) row-sum.
    counts_bf = (jnp.zeros((n_pad, n_pad), jnp.bfloat16)
                 .at[dst, src].add(jnp.bfloat16(1.0)))
    deg = jnp.zeros((n_pad,), jnp.float32).at[dst].add(1.0).reshape(n_pad, 1)
    inv_deg = jnp.where(deg > 0.0, 1.0 / deg, 0.0)        # isolated nodes -> 0

    # Lane-padded activations and projection weights (lin_l / lin_r halves).
    x_bf = (jnp.zeros((n_pad, f_pad), jnp.bfloat16)
            .at[:n, :nfeat].set(x.astype(jnp.bfloat16)))

    def pad_w(w, rows, cols):
        return (jnp.zeros((rows, cols), jnp.float32)
                .at[:w.shape[0], :w.shape[1]].set(w).astype(jnp.bfloat16))

    w1l = pad_w(params["w1l"], f_pad, h_pad)
    w1r = pad_w(params["w1r"], f_pad, h_pad)
    w2l = pad_w(params["w2l"], h_pad, h_pad)
    w2r = pad_w(params["w2r"], h_pad, h_pad)
    b1 = jnp.zeros((1, h_pad), jnp.float32).at[:, :nhid].set(params["b1l"])
    b2 = jnp.zeros((1, h_pad), jnp.float32).at[:, :nhid].set(params["b2l"])
    gamma = jnp.ones((1, h_pad), jnp.float32).at[:, :nhid].set(params["gamma"])
    beta = jnp.zeros((1, h_pad), jnp.float32).at[:, :nhid].set(params["beta"])

    cparams = pltpu.CompilerParams(
        dimension_semantics=("parallel", "arbitrary"),
        vmem_limit_bytes=int(vmem_budget))

    def full(r, c):
        return pl.BlockSpec((r, c), lambda i, k: (0, 0))

    # ---- pass 1: conv1 + L2-normalize + ReLU --------------------------------
    h_full = pl.pallas_call(
        conv1_kernel,
        out_shape=jax.ShapeDtypeStruct((n_pad, h_pad), jnp.float32),
        grid=grid,
        in_specs=[
            pl.BlockSpec((tm, tk), lambda i, k: (i, k)),      # edge counts
            pl.BlockSpec((tk, f_pad), lambda i, k: (k, 0)),   # x  (K blocks)
            pl.BlockSpec((tm, 1), lambda i, k: (i, 0)),       # 1/deg
            pl.BlockSpec((tm, f_pad), lambda i, k: (i, 0)),   # x  (row block)
            full(f_pad, h_pad),                               # W1 lin_l
            full(f_pad, h_pad),                               # W1 lin_r
            full(1, h_pad),                                   # b1
        ],
        out_specs=pl.BlockSpec((tm, h_pad), lambda i, k: (i, 0)),
        scratch_shapes=[pltpu.VMEM((tm, f_pad), jnp.float32)],
        compiler_params=cparams,
    )(counts_bf, x_bf, inv_deg, x_bf, w1l, w1r, b1)

    # ---- BatchNorm1d training-mode batch statistics (tiny XLA reduction) ----
    hr = h_full[:n]
    mean = jnp.mean(hr, axis=0, keepdims=True)
    var = jnp.mean(jnp.square(hr - mean), axis=0, keepdims=True)   # biased
    scale = gamma * jax.lax.rsqrt(var + 1e-5)
    shift = beta - mean * scale
    # Pre-apply BN affine + bf16 cast ONCE so pass 2 streams bf16 and has no
    # per-k VPU work in its inner loop.
    h_bn_bf = (h_full * scale + shift).astype(jnp.bfloat16)
    # TODO(synk): Dropout(p=0.5) treated as identity (eval mode).

    # ---- pass 2: conv2 + L2-normalize ----------------------------------------
    out_full = pl.pallas_call(
        conv2_kernel,
        out_shape=jax.ShapeDtypeStruct((n_pad, h_pad), jnp.float32),
        grid=grid,
        in_specs=[
            pl.BlockSpec((tm, tk), lambda i, k: (i, k)),      # edge counts
            pl.BlockSpec((tk, h_pad), lambda i, k: (k, 0)),   # h_bn (K blocks)
            pl.BlockSpec((tm, 1), lambda i, k: (i, 0)),       # 1/deg
            pl.BlockSpec((tm, h_pad), lambda i, k: (i, 0)),   # h_bn (row block)
            full(h_pad, h_pad),                               # W2 lin_l
            full(h_pad, h_pad),                               # W2 lin_r
            full(1, h_pad),                                   # b2
        ],
        out_specs=pl.BlockSpec((tm, h_pad), lambda i, k: (i, 0)),
        compiler_params=cparams,
    )(counts_bf, h_bn_bf, inv_deg, h_bn_bf, w2l, w2r, b2)

    return out_full[:n, :nhid]


# ---------------------------------------------------------------------------
# Deterministic parameter init (xavier_uniform_ on Linear weights, zero biases,
# fresh BatchNorm1d gamma=1 / beta=0) — mirrors SAGE.weights_init.
# ---------------------------------------------------------------------------
def xavier_uniform(key, fan_in, fan_out):
    bound = jnp.sqrt(6.0 / (fan_in + fan_out))
    return jax.random.uniform(key, (fan_in, fan_out), jnp.float32, -bound, bound)


def init_params(key, nfeat, nhid):
    k1, k2, k3, k4 = jax.random.split(key, 4)
    return {
        "w1l": xavier_uniform(k1, nfeat, nhid),        # conv1.lin_l
        "b1l": jnp.zeros((1, nhid), jnp.float32),
        "w1r": xavier_uniform(k2, nfeat, nhid),        # conv1.lin_r (no bias)
        "gamma": jnp.ones((1, nhid), jnp.float32),     # BatchNorm1d weight
        "beta": jnp.zeros((1, nhid), jnp.float32),     # BatchNorm1d bias
        "w2l": xavier_uniform(k3, nhid, nhid),         # conv2.lin_l
        "b2l": jnp.zeros((1, nhid), jnp.float32),
        "w2r": xavier_uniform(k4, nhid, nhid),         # conv2.lin_r (no bias)
    }


if __name__ == "__main__":
    N, E, NFEAT, NHID = 16, 48, 32, 32

    key = jax.random.PRNGKey(0)
    kx, ke_src, ke_dst, kp = jax.random.split(key, 4)

    x = jax.random.normal(kx, (N, NFEAT), jnp.float32)
    edge_index = jnp.stack([
        jax.random.randint(ke_src, (E,), 0, N, jnp.int32),
        jax.random.randint(ke_dst, (E,), 0, N, jnp.int32),
    ], axis=0)                                         # [2, E]

    params = init_params(kp, NFEAT, NHID)

    out = sage_forward(x, edge_index, params)
    out = jax.block_until_ready(out)

    assert out.shape == (N, NHID) and out.dtype == jnp.float32
    assert bool(jnp.all(jnp.isfinite(out)))
    print("KERNEL_OK")
</pallas_src>

<mosaic_0001>
module attributes {stable_mosaic.version = 11 : i64} {
  func.func @conv1_kernel(%arg0: i32, %arg1: i32, %arg2: memref<128x128xbf16, #tpu.memory_space<vmem>>, %arg3: memref<128x128xbf16, #tpu.memory_space<vmem>>, %arg4: memref<128x1xf32, #tpu.memory_space<vmem>>, %arg5: memref<128x128xbf16, #tpu.memory_space<vmem>>, %arg6: memref<128x128xbf16, #tpu.memory_space<vmem>>, %arg7: memref<128x128xbf16, #tpu.memory_space<vmem>>, %arg8: memref<1x128xf32, #tpu.memory_space<vmem>>, %arg9: memref<128x128xf32, #tpu.memory_space<vmem>>, %arg10: memref<128x128xf32, #tpu.memory_space<vmem>>) attributes {dimension_semantics = [#tpu.dimension_semantics<parallel>, #tpu.dimension_semantics<arbitrary>], iteration_bounds = array<i64: 1, 1>, scalar_prefetch = 0 : i64, scratch_operands = 1 : i64, tpu.core_type = #tpu.core_type<tc>, window_params = [{transform_indices = @transform_0, window_bounds = array<i64: 128, 128>}, {transform_indices = @transform_1, window_bounds = array<i64: 128, 128>}, {transform_indices = @transform_2, window_bounds = array<i64: 128, 1>}, {transform_indices = @transform_3, window_bounds = array<i64: 128, 128>}, {pipeline_mode = #tpu.pipeline_mode<synchronous>, transform_indices = @transform_4, window_bounds = array<i64: 128, 128>}, {pipeline_mode = #tpu.pipeline_mode<synchronous>, transform_indices = @transform_5, window_bounds = array<i64: 128, 128>}, {pipeline_mode = #tpu.pipeline_mode<synchronous>, transform_indices = @transform_6, window_bounds = array<i64: 1, 128>}, {transform_indices = @transform_7, window_bounds = array<i64: 128, 128>}]} {
    %c0_i32 = arith.constant 0 : i32
    %0 = arith.cmpi eq, %arg1, %c0_i32 : i32
    %1 = arith.extui %0 : i1 to i32
    %c0_i32_0 = arith.constant 0 : i32
    %2 = arith.cmpi ne, %1, %c0_i32_0 : i32
    scf.if %2 {
      %cst_10 = arith.constant 0.000000e+00 : f32
      %12 = vector.broadcast %cst_10 : f32 to vector<128x128xf32>
      %c0_11 = arith.constant 0 : index
      %c0_12 = arith.constant 0 : index
      %13 = vector.load %arg10[%c0_11, %c0_12] : memref<128x128xf32, #tpu.memory_space<vmem>>, vector<128x128xf32>
      tpu.vector_store %arg10[%c0_11, %c0_12], %12 {strides = array<i32>} : memref<128x128xf32, #tpu.memory_space<vmem>>, vector<128x128xf32>,
    } else {
    }
    %c0 = arith.constant 0 : index
    %c0_1 = arith.constant 0 : index
    %3 = vector.load %arg10[%c0, %c0_1] : memref<128x128xf32, #tpu.memory_space<vmem>>, vector<128x128xf32>
    %c0_2 = arith.constant 0 : index
    %c0_3 = arith.constant 0 : index
    %4 = vector.load %arg2[%c0_2, %c0_3] : memref<128x128xbf16, #tpu.memory_space<vmem>>, vector<128x128xbf16>
    %c0_4 = arith.constant 0 : index
    %c0_5 = arith.constant 0 : index
    %5 = vector.load %arg3[%c0_4, %c0_5] : memref<128x128xbf16, #tpu.memory_space<vmem>>, vector<128x128xbf16>
    %cst = arith.constant dense<0.000000e+00> : vector<128x128xf32>
    %6 = tpu.matmul %4, %5, %cst {dimension_numbers = #tpu.dot_dimension_numbers<[1], [0], [0], [1], [0, 0, 1, 1], [], []>} : vector<128x128xbf16>, vector<128x128xbf16>, vector<128x128xf32> -> vector<128x128xf32>
    %7 = arith.addf %3, %6 : vector<128x128xf32>
    %c0_6 = arith.constant 0 : index
    %c0_7 = arith.constant 0 : index
    %8 = vector.load %arg10[%c0_6, %c0_7] : memref<128x128xf32, #tpu.memory_space<vmem>>, vector<128x128xf32>
    tpu.vector_store %arg10[%c0_6, %c0_7], %7 {strides = array<i32>} : memref<128x128xf32, #tpu.memory_space<vmem>>, vector<128x128xf32>,
    %c0_i32_8 = arith.constant 0 : i32
    %9 = arith.cmpi eq, %arg1, %c0_i32_8 : i32
    %10 = arith.extui %9 : i1 to i32
    %c0_i32_9 = arith.constant 0 : i32
    %11 = arith.cmpi ne, %10, %c0_i32_9 : i32
    scf.if %11 {
      %c0_10 = arith.constant 0 : index
      %c0_11 = arith.constant 0 : index
      %12 = vector.load %arg10[%c0_10, %c0_11] : memref<128x128xf32, #tpu.memory_space<vmem>>, vector<128x128xf32>
      %c0_12 = arith.constant 0 : index
      %c0_13 = arith.constant 0 : index
      %13 = vector.load %arg4[%c0_12, %c0_13] : memref<128x1xf32, #tpu.memory_space<vmem>>, vector<128x1xf32>
      %14 = vector.broadcast %13 : vector<128x1xf32> to vector<128x128xf32>
      %15 = arith.mulf %12, %14 : vector<128x128xf32>
      %16 = arith.truncf %15 : vector<128x128xf32> to vector<128x128xbf16>
      %c0_14 = arith.constant 0 : index
      %c0_15 = arith.constant 0 : index
      %17 = vector.load %arg6[%c0_14, %c0_15] : memref<128x128xbf16, #tpu.memory_space<vmem>>, vector<128x128xbf16>
      %cst_16 = arith.constant dense<0.000000e+00> : vector<128x128xf32>
      %18 = tpu.matmul %16, %17, %cst_16 {dimension_numbers = #tpu.dot_dimension_numbers<[1], [0], [0], [1], [0, 0, 1, 1], [], []>} : vector<128x128xbf16>, vector<128x128xbf16>, vector<128x128xf32> -> vector<128x128xf32>
      %c0_17 = arith.constant 0 : index
      %c0_18 = arith.constant 0 : index
      %19 = vector.load %arg5[%c0_17, %c0_18] : memref<128x128xbf16, #tpu.memory_space<vmem>>, vector<128x128xbf16>
      %c0_19 = arith.constant 0 : index
      %c0_20 = arith.constant 0 : index
      %20 = vector.load %arg7[%c0_19, %c0_20] : memref<128x128xbf16, #tpu.memory_space<vmem>>, vector<128x128xbf16>
      %cst_21 = arith.constant dense<0.000000e+00> : vector<128x128xf32>
      %21 = tpu.matmul %19, %20, %cst_21 {dimension_numbers = #tpu.dot_dimension_numbers<[1], [0], [0], [1], [0, 0, 1, 1], [], []>} : vector<128x128xbf16>, vector<128x128xbf16>, vector<128x128xf32> -> vector<128x128xf32>
      %22 = arith.addf %18, %21 : vector<128x128xf32>
      %c0_22 = arith.constant 0 : index
      %c0_23 = arith.constant 0 : index
      %23 = vector.load %arg8[%c0_22, %c0_23] : memref<1x128xf32, #tpu.memory_space<vmem>>, vector<1x128xf32>
      %24 = vector.broadcast %23 : vector<1x128xf32> to vector<128x128xf32>
      %25 = arith.addf %22, %24 : vector<128x128xf32>
      %26 = arith.mulf %25, %25 : vector<128x128xf32>
      %cst_24 = arith.constant dense<0.000000e+00> : vector<128xf32>
      %27 = vector.multi_reduction <add>, %26, %cst_24 [1] : vector<128x128xf32> to vector<128xf32>
      %28 = vector.shape_cast %27 : vector<128xf32> to vector<128x1xf32>
      %cst_25 = arith.constant 1.000000e-24 : f32
      %29 = vector.broadcast %cst_25 : f32 to vector<128x1xf32>
      %30 = arith.maximumf %28, %29 : vector<128x1xf32>
      %31 = math.rsqrt %30 : vector<128x1xf32>
      %32 = vector.broadcast %31 : vector<128x1xf32> to vector<128x128xf32>
      %33 = arith.mulf %25, %32 : vector<128x128xf32>
      %cst_26 = arith.constant 0.000000e+00 : f32
      %34 = vector.broadcast %cst_26 : f32 to vector<128x128xf32>
      %35 = arith.maximumf %33, %34 : vector<128x128xf32>
      %c0_27 = arith.constant 0 : index
      %c0_28 = arith.constant 0 : index
      %36 = vector.load %arg9[%c0_27, %c0_28] : memref<128x128xf32, #tpu.memory_space<vmem>>, vector<128x128xf32>
      tpu.vector_store %arg9[%c0_27, %c0_28], %35 {strides = array<i32>} : memref<128x128xf32, #tpu.memory_space<vmem>>, vector<128x128xf32>,
    } else {
    }
    return
  }
  func.func @transform_0(%arg0: i32, %arg1: i32) -> (i32, i32) {
    %c0_i32 = arith.constant 0 : i32
    return %arg0, %arg1 : i32, i32
  }
  func.func @transform_1(%arg0: i32, %arg1: i32) -> (i32, i32) {
    %c0_i32 = arith.constant 0 : i32
    %c0_i32_0 = arith.constant 0 : i32
    return %arg1, %c0_i32 : i32, i32
  }
  func.func @transform_2(%arg0: i32, %arg1: i32) -> (i32, i32) {
    %c0_i32 = arith.constant 0 : i32
    %c0_i32_0 = arith.constant 0 : i32
    return %arg0, %c0_i32 : i32, i32
  }
  func.func @transform_3(%arg0: i32, %arg1: i32) -> (i32, i32) {
    %c0_i32 = arith.constant 0 : i32
    %c0_i32_0 = arith.constant 0 : i32
    return %arg0, %c0_i32 : i32, i32
  }
  func.func @transform_4(%arg0: i32, %arg1: i32) -> (i32, i32) {
    %c0_i32 = arith.constant 0 : i32
    %c0_i32_0 = arith.constant 0 : i32
    %c0_i32_1 = arith.constant 0 : i32
    return %c0_i32, %c0_i32_0 : i32, i32
  }
  func.func @transform_5(%arg0: i32, %arg1: i32) -> (i32, i32) {
    %c0_i32 = arith.constant 0 : i32
    %c0_i32_0 = arith.constant 0 : i32
    %c0_i32_1 = arith.constant 0 : i32
    return %c0_i32, %c0_i32_0 : i32, i32
  }
  func.func @transform_6(%arg0: i32, %arg1: i32) -> (i32, i32) {
    %c0_i32 = arith.constant 0 : i32
    %c0_i32_0 = arith.constant 0 : i32
    %c0_i32_1 = arith.constant 0 : i32
    return %c0_i32, %c0_i32_0 : i32, i32
  }
  func.func @transform_7(%arg0: i32, %arg1: i32) -> (i32, i32) {
    %c0_i32 = arith.constant 0 : i32
    %c0_i32_0 = arith.constant 0 : i32
    return %arg0, %c0_i32 : i32, i32
  }
}

</mosaic_0001>

<bundles_post_ra>
// kernel: tpu_custom_call.1
= control target key start
LH: loop header
LB: loop body
LE: loop exit
PB: predicated region body
PF: predicated region fallthrough
CT: control target
= control target key end

     0   :  { %12 = vsyncpa [#allocation4], 0  ;;  %s1698_s0 = inlined_call_operand.vmem [shape: bf16[128,128], index: 0, kind: input, shape index: {}]   ;;  %s1699_s1 = inlined_call_operand.vmem [shape: bf16[128,128], index: 1, kind: input, shape index: {}]   ;;  %s1700_s2 = inlined_call_operand.vmem [shape: f32[128,1], index: 2, kind: input, shape index: {}]   ;;  %s1701_s3 = inlined_call_operand.hbm [shape: bf16[128,128], index: 3, kind: input, shape index: {}]   ;;  %s1702_s4 = inlined_call_operand.hbm [shape: bf16[128,128], index: 4, kind: input, shape index: {}]   ;;  %s1703_s5 = inlined_call_operand.hbm [shape: bf16[128,128], index: 5, kind: input, shape index: {}]   ;;  %s1704_s6 = inlined_call_operand.vmem [shape: f32[1,128], index: 6, kind: input, shape index: {}]   ;;  %s1705_s7 = inlined_call_operand.hbm [shape: f32[128,128], index: 7, kind: output, shape index: {}]  }
   0x1   :  { %13 = vsyncpa [#allocation7], 0 }
   0x2   :  { %14 = vsyncpa [#allocation5], 0  ;;  %s38_s26 = sshll.u32 %s1702_s4, 4  ;;  %s1431_s27 = smov [#allocation6]   ;;  %s39_s26 = int_to_ptr.hbm [resolvable:$true] %s38_s26 }
   0x3   :  { %s40_s28 = sshll.u32 %s1431_s27, 4  ;;  %s25_s8 = sshll.u32 %s1701_s3, 4  ;;  %s41_s28 = int_to_ptr.vmem [resolvable:$true] %s40_s28  ;;  %s26_s8 = int_to_ptr.hbm [resolvable:$true] %s25_s8 }
   0x4   :  { %s1432_s9 = smov 64   ;;  %s1433_s10 = smov 4  }
   0x5   :  { %46 = dma.hbm_to_vmem [thread:$0]  %s39_s26, 1024, %s41_s28, [#allocation7], %s1432_s9, %s1432_s9, %s1433_s10  }
   0x6   :  { %s1434_s11 = smov [#allocation3]   ;;  %s51_s15 = sshll.u32 %s1703_s5, 4  ;;  %s52_s15 = int_to_ptr.hbm [resolvable:$true] %s51_s15 }
   0x7   :  { %s27_s12 = sshll.u32 %s1434_s11, 4  ;;  %s1435_s4 = smov [#allocation8]   ;;  %s28_s12 = int_to_ptr.vmem [resolvable:$true] %s27_s12 }
   0x8   :  { %33 = dma.hbm_to_vmem [thread:$0]  %s26_s8, 1024, %s28_s12, [#allocation4], %s1432_s9, %s1432_s9, %s1433_s10  }
   0x9   :  { %s53_s16 = sshll.u32 %s1435_s4, 4  ;;  %s54_s16 = int_to_ptr.vmem [resolvable:$true] %s53_s16 }
   0xa   :  { %59 = dma.hbm_to_vmem [thread:$0]  %s52_s15, 1024, %s54_s16, [#allocation7], %s1432_s9, %s1432_s9, %s1433_s10  }
   0xb   :  { %1425 = dma.done.wait [#allocation4], 1024  }
   0xc   :  { %1426 = vsyncadd [#allocation4], 4294966272 }
   0xd   :  { %1427 = dma.done.wait [#allocation7], 2048  }
   0xe   :  { %1428 = vsyncadd [#allocation7], 4294965248  ;;  %v1436_v0 = vmov 0   ;;  %v1235_v1 = vld [vmem:[%s1699_s1 + $0x38] sm:$0xff]  ;;  %v338_v2 = vld [vmem:[%s1700_s2] sm:$0xff]  ;;  %s1046_s29 = sshll.u32 %s1705_s7, 4  ;;  %s1047_s29 = int_to_ptr.hbm [resolvable:$true] %s1046_s29 }
   0xf   :  { %1293 = vset.pattern.permute.xlu0 %v1436_v0  ;;  %1294 = vset.pattern.permute.xlu1 %v1436_v0  ;;  %v1234_v3 = vld [vmem:[%s1699_s1 + $0x30] sm:$0xff]  ;;  %v1233_v5 = vld [vmem:[%s1699_s1 + $0x28] sm:$0xff]  ;;  %v341_v7 = vld [vmem:[%s1700_s2 + $0x18] sm:$0xff]  ;;  %s1438_s30 = smov 128  }
  0x10   :  { %1295 = vset.pattern.permute.xlu2 %v1436_v0  ;;  %356 = vperm.xlu0 %1293, %v338_v2   ;;  %v340_v4 = vld [vmem:[%s1700_s2 + $0x10] sm:$0xff]  ;;  %v339_v6 = vld [vmem:[%s1700_s2 + $0x8] sm:$0xff]  ;;  %v1232_v8 = vld [vmem:[%s1699_s1 + $0x20] sm:$0xff] }
  0x11   :  { %238 = vmatpush.bf16.msra.mxu0 %v1235_v1  ;;  %1260 = vmatpush.bf16.msra.mxu3 %v1235_v1  ;;  %v1231_v9 = vld [vmem:[%s1699_s1 + $0x18] sm:$0xff]  ;;  %v344_v10 = vld [vmem:[%s1700_s2 + $0x30] sm:$0xff]  ;;  %v342_v12 = vld [vmem:[%s1700_s2 + $0x20] sm:$0xff] }
  0x12   :  { %366 = vperm.xlu1 %1294, %v340_v4   ;;  %v345_v11 = vld [vmem:[%s1700_s2 + $0x38] sm:$0xff]  ;;  %v1230_v13 = vld [vmem:[%s1699_s1 + $0x10] sm:$0xff]  ;;  %376 = vperm.xlu2 %1295, %v342_v12   ;;  %v1229_v14 = vld [vmem:[%s1699_s1 + $0x8] sm:$0xff] }
  0x13   :  { %v347_v15 = vld [vmem:[%s1700_s2 + $0x48] sm:$0xff]  ;;  %v350_v16 = vld [vmem:[%s1700_s2 + $0x60] sm:$0xff]  ;;  %v1226_v19 = vld [vmem:[%s1698_s0 + $0x30] sm:$0xff] }
  0x14   :  { %v1228_v17 = vld [vmem:[%s1699_s1] sm:$0xff]  ;;  %v348_v20 = vld [vmem:[%s1700_s2 + $0x50] sm:$0xff]  ;;  %v349_v21 = vld [vmem:[%s1700_s2 + $0x58] sm:$0xff]  ;;  %s1439_s1 = smov 8  }
  0x15   :  { %239 = vmatpush.bf16.msra.mxu0 %v1234_v3  ;;  %1261 = vmatpush.bf16.msra.mxu3 %v1234_v3  ;;  %v1220_v18 = vld [vmem:[%s1698_s0] sm:$0xff]  ;;  %v343_v22 = vld [vmem:[%s1700_s2 + $0x28] sm:$0xff]  ;;  %v353_v23 = vld [vmem:[%s1700_s2 + $0x78] sm:$0xff] }
  0x16   :  { %v346_v24 = vld [vmem:[%s1700_s2 + $0x40] sm:$0xff]  ;;  %v1221_v25 = vld [vmem:[%s1698_s0 + $0x8] sm:$0xff]  ;;  %v1227_v26 = vld [vmem:[%s1698_s0 + $0x38] sm:$0xff] }
  0x17   :  { %v351_v27 = vld [vmem:[%s1700_s2 + $0x68] sm:$0xff]  ;;  %v1222_v28 = vld [vmem:[%s1698_s0 + $0x10] sm:$0xff]  ;;  %v1223_v30 = vld [vmem:[%s1698_s0 + $0x18] sm:$0xff] }
  0x18   :  { %361 = vperm.xlu0 %1293, %v339_v6   ;;  %v352_v29 = vld [vmem:[%s1700_s2 + $0x70] sm:$0xff]  ;;  %v1259_v31 = vld [vmem:[#allocation8 + $0x38] sm:$0xff]  ;;  %v1257_v33 = vld [vmem:[#allocation8 + $0x28] sm:$0xff] }
  0x19   :  { %240 = vmatpush.bf16.msra.mxu0 %v1233_v5  ;;  %1262 = vmatpush.bf16.msra.mxu3 %v1233_v5  ;;  %v1258_v32 = vld [vmem:[#allocation8 + $0x30] sm:$0xff]  ;;  %v1256_v34 = vld [vmem:[#allocation8 + $0x20] sm:$0xff]  ;;  %v1255_v36 = vld [vmem:[#allocation8 + $0x18] sm:$0xff] }
  0x1a   :  { %371 = vperm.xlu1 %1294, %v341_v7   ;;  %381 = vperm.xlu2 %1295, %v343_v22   ;;  %v1224_v35 = vld [vmem:[%s1698_s0 + $0x20] sm:$0xff]  ;;  %v1254_v37 = vld [vmem:[#allocation8 + $0x10] sm:$0xff]  ;;  %v1243_v38 = vld [vmem:[#allocation6 + $0x38] sm:$0xff] }
  0x1b   :  { %602 = vmatpush.bf16.msra.mxu1 %v1259_v31  ;;  %699 = vmatpush.bf16.msra.mxu2 %v1243_v38  ;;  %v1253_v39 = vld [vmem:[#allocation8 + $0x8] sm:$0xff]  ;;  %v1252_v40 = vld [vmem:[#allocation8] sm:$0xff]  ;;  %v1242_v41 = vld [vmem:[#allocation6 + $0x30] sm:$0xff] }
  0x1c   :  { %v1225_v42 = vld [vmem:[%s1698_s0 + $0x28] sm:$0xff]  ;;  %v1250_v43 = vld [vmem:[#allocation3 + $0x30] sm:$0xff]  ;;  %v1240_v45 = vld [vmem:[#allocation6 + $0x20] sm:$0xff] }
  0x1d   :  { %241 = vmatpush.bf16.msra.mxu0 %v1232_v8  ;;  %1263 = vmatpush.bf16.msra.mxu3 %v1232_v8  ;;  %v1241_v44 = vld [vmem:[#allocation6 + $0x28] sm:$0xff]  ;;  %v1239_v46 = vld [vmem:[#allocation6 + $0x18] sm:$0xff]  ;;  %v1238_v47 = vld [vmem:[#allocation6 + $0x10] sm:$0xff] }
  0x1e   :  { %v1251_v48 = vld [vmem:[#allocation3 + $0x38] sm:$0xff]  ;;  %v1237_v49 = vld [vmem:[#allocation6 + $0x8] sm:$0xff]  ;;  %v1236_v50 = vld [vmem:[#allocation6] sm:$0xff] }
  0x1f   :  { %603 = vmatpush.bf16.msra.mxu1 %v1258_v32  ;;  %700 = vmatpush.bf16.msra.mxu2 %v1242_v41  ;;  %v1244_v51 = vld [vmem:[#allocation3] sm:$0xff]  ;;  %v1245_v58 = vld [vmem:[#allocation3 + $0x8] sm:$0xff]  ;;  %v1246_v3 = vld [vmem:[#allocation3 + $0x10] sm:$0xff] }
  0x20   :  { %386 = vperm.xlu0 %1293, %v344_v10  }
  0x21   :  { %242 = vmatpush.bf16.msra.mxu0 %v1231_v9  ;;  %1264 = vmatpush.bf16.msra.mxu3 %v1231_v9 }
  0x22   :  { %391 = vperm.xlu1 %1294, %v345_v11   ;;  %396 = vperm.xlu2 %1295, %v346_v24  }
  0x23   :  { %604 = vmatpush.bf16.msra.mxu1 %v1257_v33  ;;  %701 = vmatpush.bf16.msra.mxu2 %v1241_v44 }
  0x25   :  { %243 = vmatpush.bf16.msra.mxu0 %v1230_v13  ;;  %1265 = vmatpush.bf16.msra.mxu3 %v1230_v13 }
  0x27   :  { %605 = vmatpush.bf16.msra.mxu1 %v1256_v34  ;;  %702 = vmatpush.bf16.msra.mxu2 %v1240_v45 }
  0x28   :  { %401 = vperm.xlu0 %1293, %v347_v15  }
  0x29   :  { %244 = vmatpush.bf16.msra.mxu0 %v1229_v14  ;;  %1266 = vmatpush.bf16.msra.mxu3 %v1229_v14 }
  0x2a   :  { %416 = vperm.xlu1 %1294, %v350_v16   ;;  %421 = vperm.xlu2 %1295, %v351_v27  }
  0x2b   :  { %606 = vmatpush.bf16.msra.mxu1 %v1255_v36  ;;  %703 = vmatpush.bf16.msra.mxu2 %v1239_v46 }
  0x2d   :  { %245 = vmatpush.bf16.msra.mxu0 %v1228_v17  ;;  %1267 = vmatpush.bf16.msra.mxu3 %v1228_v17 }
  0x2f   :  { %607 = vmatpush.bf16.msra.mxu1 %v1254_v37  ;;  %704 = vmatpush.bf16.msra.mxu2 %v1238_v47 }
  0x30   :  { %246 = vmatmul.bf16.vlgmr.msra.gmra.mxu0 %v1220_v18  ;;  %276 = vmatmul.bf16.vlgmr.msra.gmra.mxu3 %v1226_v19  ;;  %v1247_v18 = vld [vmem:[#allocation3 + $0x18] sm:$0xff] }
  0x31   :  { %406 = vperm.xlu0 %1293, %v348_v20   ;;  %1268 = vmatpush.bf16.msrb.mxu3 %v1259_v31 }
  0x32   :  { %411 = vperm.xlu1 %1294, %v349_v21   ;;  %426 = vperm.xlu2 %1295, %v352_v29  }
  0x33   :  { %608 = vmatpush.bf16.msra.mxu1 %v1253_v39  ;;  %705 = vmatpush.bf16.msra.mxu2 %v1237_v49 }
  0x35   :  { %1269 = vmatpush.bf16.msrb.mxu3 %v1258_v32 }
  0x37   :  { %609 = vmatpush.bf16.msra.mxu1 %v1252_v40  ;;  %706 = vmatpush.bf16.msra.mxu2 %v1236_v50 }
  0x39   :  { %431 = vperm.xlu0 %1293, %v353_v23   ;;  %1270 = vmatpush.bf16.msrb.mxu3 %v1257_v33 }
  0x3a   :  { %610 = vmatmul.bf16.vlgmr.msra.gmra.mxu1 %v1244_v51 }
  0x3d   :  { %1271 = vmatpush.bf16.msrb.mxu3 %v1256_v34 }
  0x40   :  { %251 = vmatmul.bf16.gmra.mxu0 %v1221_v25  ;;  %281 = vmatmul.bf16.gmra.mxu3 %v1227_v26 }
  0x41   :  { %1272 = vmatpush.bf16.msrb.mxu3 %v1255_v36  ;;  %v1249_v36 = vld [vmem:[#allocation3 + $0x28] sm:$0xff] }
  0x45   :  { %1273 = vmatpush.bf16.msrb.mxu3 %v1254_v37 }
  0x49   :  { %1274 = vmatpush.bf16.msrb.mxu3 %v1253_v39 }
  0x4a   :  { %615 = vmatmul.bf16.gmra.mxu1 %v1245_v58 }
  0x4d   :  { %1275 = vmatpush.bf16.msrb.mxu3 %v1252_v40 }
  0x50   :  { %256 = vmatmul.bf16.gmra.mxu0 %v1222_v28  ;;  %640 = vmatmul.bf16.vlgmr.msrb.gmra.mxu3 %v1250_v43 }
  0x51   :  { %1276 = vmatpush.bf16.msra.mxu3 %v1243_v38 }
  0x55   :  { %1277 = vmatpush.bf16.msra.mxu3 %v1242_v41 }
  0x59   :  { %1278 = vmatpush.bf16.msra.mxu3 %v1241_v44 }
  0x5a   :  { %620 = vmatmul.bf16.gmra.mxu1 %v1246_v3 }
  0x5d   :  { %1279 = vmatpush.bf16.msra.mxu3 %v1240_v45 }
  0x60   :  { %261 = vmatmul.bf16.gmra.mxu0 %v1223_v30  ;;  %645 = vmatmul.bf16.gmra.mxu3 %v1251_v48  ;;  %v1248_v30 = vld [vmem:[#allocation3 + $0x20] sm:$0xff] }
  0x61   :  { %1280 = vmatpush.bf16.msra.mxu3 %v1239_v46 }
  0x65   :  { %1281 = vmatpush.bf16.msra.mxu3 %v1238_v47 }
  0x69   :  { %1282 = vmatpush.bf16.msra.mxu3 %v1237_v49 }
  0x6a   :  { %625 = vmatmul.bf16.gmra.mxu1 %v1247_v18 }
  0x6c   :  { %v377_v54 = vpop.permute.xlu2 %376 }
  0x6d   :  { %1283 = vmatpush.bf16.msra.mxu3 %v1236_v50 }
  0x70   :  { %266 = vmatmul.bf16.gmra.mxu0 %v1224_v35 }
  0x74   :  { %v382_v57 = vpop.permute.xlu2 %381 }
  0x7a   :  { %630 = vmatmul.bf16.gmra.mxu1 %v1248_v30 }
  0x7c   :  { %v397_v62 = vpop.permute.xlu2 %396 }
  0x80   :  { %271 = vmatmul.bf16.gmra.mxu0 %v1225_v42 }
  0x82   :  { %v357_v52 = vpop.permute.xlu0 %356 }
  0x84   :  { %v367_v53 = vpop.permute.xlu1 %366  ;;  %v422_v7 = vpop.permute.xlu2 %421 }
  0x8a   :  { %v362_v55 = vpop.permute.xlu0 %361  ;;  %635 = vmatmul.bf16.gmra.mxu1 %v1249_v36 }
  0x8c   :  { %v372_v56 = vpop.permute.xlu1 %371  ;;  %v427_v19 = vpop.permute.xlu2 %426 }
  0x92   :  { %v387_v59 = vpop.permute.xlu0 %386 }
  0x94   :  { %v392_v61 = vpop.permute.xlu1 %391 }
  0x9a   :  { %v402_v4 = vpop.permute.xlu0 %401 }
  0x9c   :  { %v417_v6 = vpop.permute.xlu1 %416 }
  0xa3   :  { %v407_v13 = vpop.permute.xlu0 %406 }
  0xa4   :  { %v412_v44 = vpop.permute.xlu1 %411 }
  0xab   :  { %v432_v22 = vpop.permute.xlu0 %431 }
  0xad   :  { %v247_v60 = vpop.f32.mrf.mxu0 }
  0xae   :  { %v434_v1 = vmul.f32 %v357_v52, %v247_v60 }
  0xb3   :  { %v277_v63 = vpop.f32.mrf.mxu3 }
  0xb4   :  { %v446_v8 = vmul.f32 %v417_v6, %v277_v63 }
  0xb5   :  { %v249_v0 = vpop.f32.mrf.mxu0 }
  0xb6   :  { %v435_v2 = vmul.f32 %v362_v55, %v249_v0 }
  0xb7   :  { %v611_v51 = vpop.f32.mrf.mxu1 }
  0xb8   :  { %v450_v5 = vpack.c.bf16 %v435_v2, %v434_v1 }
  0xba   :  { %707 = vmatmul.bf16.vlgmr.msra.gmra.mxu2 %v450_v5 }
  0xbb   :  { %v279_v9 = vpop.f32.mrf.mxu3 }
  0xbc   :  { %v447_v10 = vmul.f32 %v422_v7, %v279_v9 }
  0xbd   :  { %v252_v11 = vpop.f32.mrf.mxu0 }
  0xbe   :  { %v456_v12 = vpack.c.bf16 %v447_v10, %v446_v8  ;;  %v436_v16 = vmul.f32 %v367_v53, %v252_v11 }
  0xbf   :  { %v613_v53 = vpop.f32.mrf.mxu1 }
  0xc0   :  { %737 = vmatmul.bf16.vlgmr.msra.gmra.mxu3 %v456_v12 }
  0xc3   :  { %v282_v14 = vpop.f32.mrf.mxu3 }
  0xc4   :  { %v448_v21 = vmul.f32 %v427_v19, %v282_v14 }
  0xc5   :  { %v254_v15 = vpop.f32.mrf.mxu0 }
  0xc6   :  { %v437_v17 = vmul.f32 %v372_v56, %v254_v15  ;;  %v1594_v56 = vld [vmem:[%s1704_s6] ss:$0 sm:$0xff]  ;;  %s1437_s6 = smov [#allocation9]  }
  0xc7   :  { %v616_v55 = vpop.f32.mrf.mxu1  ;;  %s1044_s26 = sshll.u32 %s1437_s6, 4  ;;  %s1045_s26 = int_to_ptr.vmem [resolvable:$true] %s1044_s26 }
  0xc8   :  { %v451_v20 = vpack.c.bf16 %v437_v17, %v436_v16 }
  0xca   :  { %712 = vmatmul.bf16.gmra.mxu2 %v451_v20 }
  0xcb   :  { %v284_v23 = vpop.f32.mrf.mxu3 }
  0xcc   :  { %v449_v24 = vmul.f32 %v432_v22, %v284_v23 }
  0xcd   :  { %v257_v25 = vpop.f32.mrf.mxu0 }
  0xce   :  { %v457_v26 = vpack.c.bf16 %v449_v24, %v448_v21  ;;  %v438_v28 = vmul.f32 %v377_v54, %v257_v25 }
  0xcf   :  { %v618_v0 = vpop.f32.mrf.mxu1 }
  0xd0   :  { %742 = vmatmul.bf16.gmra.mxu3 %v457_v26 }
  0xd3   :  { %v641_v49 = vpop.f32.mrf.mxu3 }
  0xd5   :  { %v259_v27 = vpop.f32.mrf.mxu0 }
  0xd6   :  { %v439_v29 = vmul.f32 %v382_v57, %v259_v27 }
  0xd7   :  { %v621_v8 = vpop.f32.mrf.mxu1 }
  0xd8   :  { %v452_v31 = vpack.c.bf16 %v439_v29, %v438_v28 }
  0xda   :  { %717 = vmatmul.bf16.gmra.mxu2 %v452_v31 }
  0xdb   :  { %v1585_v50 = vpop.f32.mrf.mxu3 }
  0xdd   :  { %v262_v32 = vpop.f32.mrf.mxu0 }
  0xde   :  { %v440_v34 = vmul.f32 %v387_v59, %v262_v32 }
  0xdf   :  { %v623_v14 = vpop.f32.mrf.mxu1 }
  0xe3   :  { %v1587_v52 = vpop.f32.mrf.mxu3 }
  0xe5   :  { %v264_v33 = vpop.f32.mrf.mxu0 }
  0xe6   :  { %v441_v35 = vmul.f32 %v392_v61, %v264_v33 }
  0xe7   :  { %v626_v20 = vpop.f32.mrf.mxu1 }
  0xe8   :  { %v453_v37 = vpack.c.bf16 %v441_v35, %v440_v34 }
  0xea   :  { %722 = vmatmul.bf16.gmra.mxu2 %v453_v37 }
  0xeb   :  { %v1589_v54 = vpop.f32.mrf.mxu3 }
  0xed   :  { %v267_v38 = vpop.f32.mrf.mxu0 }
  0xee   :  { %v442_v40 = vmul.f32 %v397_v62, %v267_v38 }
  0xef   :  { %v628_v25 = vpop.f32.mrf.mxu1 }
  0xf5   :  { %v269_v39 = vpop.f32.mrf.mxu0 }
  0xf6   :  { %v443_v41 = vmul.f32 %v402_v4, %v269_v39 }
  0xf7   :  { %v631_v33 = vpop.f32.mrf.mxu1 }
  0xf8   :  { %v454_v42 = vpack.c.bf16 %v443_v41, %v442_v40 }
  0xfa   :  { %727 = vmatmul.bf16.gmra.mxu2 %v454_v42 }
  0xfd   :  { %v272_v43 = vpop.f32.mrf.mxu0 }
  0xfe   :  { %v444_v46 = vmul.f32 %v407_v13, %v272_v43 }
  0xff   :  { %v633_v40 = vpop.f32.mrf.mxu1 }
 0x105   :  { %v274_v45 = vpop.f32.mrf.mxu0 }
 0x106   :  { %v445_v47 = vmul.f32 %v412_v44, %v274_v45 }
 0x108   :  { %v455_v48 = vpack.c.bf16 %v445_v47, %v444_v46 }
 0x10a   :  { %732 = vmatmul.bf16.gmra.mxu2 %v455_v48  ;;  %v636_v48 = vpop.f32.mrf.mxu1 }
 0x13d   :  { %v708_v57 = vpop.f32.mrf.mxu2 }
 0x13e   :  { %v709_v58 = vadd.f32 %v708_v57, %v611_v51 }
 0x140   :  { %v1597_v59 = vadd.f32 %v1594_v56, %v709_v58 }
 0x142   :  { %v768_v60 = vmul.f32 %v1597_v59, %v1597_v59 }
 0x143   :  { %v738_v61 = vpop.f32.mrf.mxu3 }
 0x144   :  { %v739_v62 = vadd.f32 %v738_v61, %v641_v49  ;;  %784 = vadd.xlane.f32.xlu1 %v768_v60  ;;  %v638_v60 = vpop.f32.mrf.mxu1 }
 0x145   :  { %v710_v63 = vpop.f32.mrf.mxu2 }
 0x146   :  { %v1602_v1 = vadd.f32 %v1594_v56, %v739_v62  ;;  %v711_v2 = vadd.f32 %v710_v63, %v613_v53 }
 0x148   :  { %v1605_v3 = vadd.f32 %v1594_v56, %v711_v2  ;;  %v780_v4 = vmul.f32 %v1602_v1, %v1602_v1 }
 0x14a   :  { %808 = vadd.xlane.f32.xlu0 %v780_v4  ;;  %v769_v5 = vmul.f32 %v1605_v3, %v1605_v3 }
 0x14b   :  { %v740_v30 = vpop.f32.mrf.mxu3 }
 0x14c   :  { %786 = vadd.xlane.f32.xlu2 %v769_v5  ;;  %v741_v57 = vadd.f32 %v740_v30, %v1585_v50 }
 0x14d   :  { %v713_v6 = vpop.f32.mrf.mxu2 }
 0x14e   :  { %v714_v7 = vadd.f32 %v713_v6, %v616_v55  ;;  %v1664_v62 = vadd.f32 %v1594_v56, %v741_v57 }
 0x150   :  { %v1612_v9 = vadd.f32 %v1594_v56, %v714_v7  ;;  %v781_v4 = vmul.f32 %v1664_v62, %v1664_v62 }
 0x152   :  { %v770_v10 = vmul.f32 %v1612_v9, %v1612_v9 }
 0x153   :  { %v743_v36 = vpop.f32.mrf.mxu3 }
 0x154   :  { %788 = vadd.xlane.f32.xlu0 %v770_v10  ;;  %v744_v2 = vadd.f32 %v743_v36, %v1587_v52 }
 0x155   :  { %v715_v11 = vpop.f32.mrf.mxu2 }
 0x156   :  { %v716_v12 = vadd.f32 %v715_v11, %v618_v0  ;;  %v1675_v5 = vadd.f32 %v1594_v56, %v744_v2 }
 0x158   :  { %v1617_v13 = vadd.f32 %v1594_v56, %v716_v12  ;;  %v782_v6 = vmul.f32 %v1675_v5, %v1675_v5 }
 0x15a   :  { %v771_v15 = vmul.f32 %v1617_v13, %v1617_v13 }
 0x15b   :  { %v745_v44 = vpop.f32.mrf.mxu3 }
 0x15c   :  { %790 = vadd.xlane.f32.xlu2 %v771_v15  ;;  %v746_v46 = vadd.f32 %v745_v44, %v1589_v54 }
 0x15d   :  { %v718_v16 = vpop.f32.mrf.mxu2 }
 0x15e   :  { %v719_v17 = vadd.f32 %v718_v16, %v621_v8  ;;  %v1653_v51 = vadd.f32 %v1594_v56, %v746_v46 }
 0x160   :  { %v1622_v18 = vadd.f32 %v1594_v56, %v719_v17  ;;  %v783_v58 = vmul.f32 %v1653_v51, %v1653_v51 }
 0x162   :  { %v772_v19 = vmul.f32 %v1622_v18, %v1622_v18 }
 0x164   :  { %792 = vadd.xlane.f32.xlu1 %v772_v19 }
 0x165   :  { %v720_v21 = vpop.f32.mrf.mxu2 }
 0x166   :  { %v721_v22 = vadd.f32 %v720_v21, %v623_v14 }
 0x168   :  { %v1627_v23 = vadd.f32 %v1594_v56, %v721_v22 }
 0x16a   :  { %v773_v24 = vmul.f32 %v1627_v23, %v1627_v23 }
 0x16c   :  { %794 = vadd.xlane.f32.xlu2 %v773_v24 }
 0x16d   :  { %v723_v26 = vpop.f32.mrf.mxu2 }
 0x16e   :  { %v724_v27 = vadd.f32 %v723_v26, %v626_v20 }
 0x170   :  { %v1632_v28 = vadd.f32 %v1594_v56, %v724_v27 }
 0x172   :  { %v774_v29 = vmul.f32 %v1632_v28, %v1632_v28 }
 0x174   :  { %796 = vadd.xlane.f32.xlu0 %v774_v29 }
 0x175   :  { %v725_v31 = vpop.f32.mrf.mxu2 }
 0x176   :  { %v726_v32 = vadd.f32 %v725_v31, %v628_v25 }
 0x178   :  { %v1637_v34 = vadd.f32 %v1594_v56, %v726_v32 }
 0x17a   :  { %v775_v35 = vmul.f32 %v1637_v34, %v1637_v34 }
 0x17c   :  { %798 = vadd.xlane.f32.xlu1 %v775_v35 }
 0x17d   :  { %v728_v37 = vpop.f32.mrf.mxu2 }
 0x17e   :  { %v729_v38 = vadd.f32 %v728_v37, %v631_v33 }
 0x180   :  { %v1642_v39 = vadd.f32 %v1594_v56, %v729_v38 }
 0x182   :  { %v776_v41 = vmul.f32 %v1642_v39, %v1642_v39 }
 0x184   :  { %800 = vadd.xlane.f32.xlu2 %v776_v41 }
 0x185   :  { %v730_v42 = vpop.f32.mrf.mxu2 }
 0x186   :  { %v731_v43 = vadd.f32 %v730_v42, %v633_v40 }
 0x188   :  { %v1647_v45 = vadd.f32 %v1594_v56, %v731_v43 }
 0x18a   :  { %v777_v47 = vmul.f32 %v1647_v45, %v1647_v45 }
 0x18c   :  { %802 = vadd.xlane.f32.xlu0 %v777_v47 }
 0x18d   :  { %v733_v49 = vpop.f32.mrf.mxu2 }
 0x18e   :  { %v734_v53 = vadd.f32 %v733_v49, %v636_v48 }
 0x190   :  { %v1656_v55 = vadd.f32 %v1594_v56, %v734_v53 }
 0x192   :  { %v778_v54 = vmul.f32 %v1656_v55, %v1656_v55 }
 0x194   :  { %814 = vadd.xlane.f32.xlu0 %v783_v58  ;;  %804 = vadd.xlane.f32.xlu1 %v778_v54 }
 0x195   :  { %v735_v61 = vpop.f32.mrf.mxu2 }
 0x196   :  { %v736_v63 = vadd.f32 %v735_v61, %v638_v60 }
 0x198   :  { %v1667_v0 = vadd.f32 %v1594_v56, %v736_v63 }
 0x19a   :  { %v779_v50 = vmul.f32 %v1667_v0, %v1667_v0 }
 0x19c   :  { %806 = vadd.xlane.f32.xlu2 %v779_v50  ;;  %810 = vadd.xlane.f32.xlu1 %v781_v4 }
 0x1a4   :  { %812 = vadd.xlane.f32.xlu2 %v782_v6 }
 0x1b7   :  { %v785_v7 = vpop.xlane.xlu1 %784 }
 0x1b8   :  { %v816_v8 = vmax.f32 %v785_v7, 1e-24 }
 0x1ba   :  { %1297 = vrsqrt.f32 %v816_v8  ;;  %vm838_vm1 = vweird.f32 %v816_v8 }
 0x1bd   :  { %v809_v10 = vpop.xlane.xlu0 %808 }
 0x1be   :  { %v828_v52 = vmax.f32 %v809_v10, 1e-24 }
 0x1bf   :  { %v787_v11 = vpop.xlane.xlu2 %786 }
 0x1c0   :  { %v1298_v12 = vpop.eup %1297  ;;  %1299 = vrsqrt.f32 %v828_v52  ;;  %v817_v14 = vmax.f32 %v787_v11, 1e-24  ;;  %vm958_vm4 = vweird.f32 %v828_v52 }
 0x1c1   :  { %v833_v15 = vmul.f32 %v1298_v12, %v816_v8  ;;  %vm839_vm0 = vweird.f32 %v1298_v12 }
 0x1c2   :  { %1301 = vrsqrt.f32 %v817_v14  ;;  %vm840_vm2 = vmor %vm838_vm1, %vm839_vm0  ;;  %vm848_vm7 = vweird.f32 %v817_v14 }
 0x1c3   :  { %v834_v16 = vmul.f32 %v1298_v12, %v833_v15 }
 0x1c5   :  { %v835_v17 = vmul.f32 0.5, %v834_v16 }
 0x1c6   :  { %v1300_v19 = vpop.eup %1299 }
 0x1c7   :  { %v836_v56 = vsub.f32 1.5, %v835_v17  ;;  %v953_v20 = vmul.f32 %v1300_v19, %v828_v52  ;;  %v789_v21 = vpop.xlane.xlu0 %788  ;;  %vm959_vm3 = vweird.f32 %v1300_v19 }
 0x1c8   :  { %v1302_v22 = vpop.eup %1301  ;;  %v818_v24 = vmax.f32 %v789_v21, 1e-24  ;;  %vm960_vm6 = vmor %vm958_vm4, %vm959_vm3 }
 0x1c9   :  { %v837_v25 = vmul.f32 %v1298_v12, %v836_v56  ;;  %v954_v26 = vmul.f32 %v1300_v19, %v953_v20  ;;  %v843_v27 = vmul.f32 %v1302_v22, %v817_v14  ;;  %vm849_vm5 = vweird.f32 %v1302_v22 }
 0x1ca   :  { %1303 = vrsqrt.f32 %v818_v24  ;;  %vm850_vm8 = vmor %vm848_vm7, %vm849_vm5  ;;  %vm858_vm10 = vweird.f32 %v818_v24 }
 0x1cb   :  { %v841_v29 = vsel %vm840_vm2, %v1298_v12, %v837_v25  ;;  %v955_v30 = vmul.f32 0.5, %v954_v26  ;;  %v844_v31 = vmul.f32 %v1302_v22, %v843_v27 }
 0x1cc   :  { %v992_v32 = vmul.f32 %v841_v29, %v1597_v59 }
 0x1cd   :  { %v956_v33 = vsub.f32 1.5, %v955_v30  ;;  %v845_v35 = vmul.f32 0.5, %v844_v31 }
 0x1ce   :  { %v1008_v36 = vmax.f32 %v992_v32, 0.0 }
 0x1cf   :  { %v957_v37 = vmul.f32 %v1300_v19, %v956_v33  ;;  %v846_v38 = vsub.f32 1.5, %v845_v35  ;;  %v791_v40 = vpop.xlane.xlu2 %790 }
 0x1d0   :  { %v1304_v41 = vpop.eup %1303  ;;  %1024 = vst [vmem:[#allocation9] sm:$0xff] %v1008_v36  ;;  %v819_v42 = vmax.f32 %v791_v40, 1e-24 }
 0x1d1   :  { %v961_v43 = vsel %vm960_vm6, %v1300_v19, %v957_v37  ;;  %v847_v44 = vmul.f32 %v1302_v22, %v846_v38  ;;  %v853_v46 = vmul.f32 %v1304_v41, %v818_v24  ;;  %vm859_vm9 = vweird.f32 %v1304_v41 }
 0x1d2   :  { %v1004_v47 = vmul.f32 %v961_v43, %v1602_v1  ;;  %1305 = vrsqrt.f32 %v819_v42  ;;  %vm860_vm11 = vmor %vm858_vm10, %vm859_vm9  ;;  %vm868_vm13 = vweird.f32 %v819_v42 }
 0x1d3   :  { %v851_v59 = vsel %vm850_vm8, %v1302_v22, %v847_v44  ;;  %v854_v48 = vmul.f32 %v1304_v41, %v853_v46 }
 0x1d4   :  { %v1020_v49 = vmax.f32 %v1004_v47, 0.0  ;;  %v993_v53 = vmul.f32 %v851_v59, %v1605_v3 }
 0x1d5   :  { %v855_v57 = vmul.f32 0.5, %v854_v48 }
 0x1d6   :  { %1036 = vst [vmem:[#allocation9 + $0x60] sm:$0xff] %v1020_v49  ;;  %v1009_v58 = vmax.f32 %v993_v53, 0.0 }
 0x1d7   :  { %v856_v54 = vsub.f32 1.5, %v855_v57  ;;  %v793_v60 = vpop.xlane.xlu1 %792 }
 0x1d8   :  { %v1306_v61 = vpop.eup %1305  ;;  %1025 = vst [vmem:[#allocation9 + $0x8] sm:$0xff] %v1009_v58  ;;  %v820_v63 = vmax.f32 %v793_v60, 1e-24 }
 0x1d9   :  { %v857_v2 = vmul.f32 %v1304_v41, %v856_v54  ;;  %v863_v50 = vmul.f32 %v1306_v61, %v819_v42  ;;  %vm869_vm12 = vweird.f32 %v1306_v61 }
 0x1da   :  { %1307 = vrsqrt.f32 %v820_v63  ;;  %vm870_vm14 = vmor %vm868_vm13, %vm869_vm12  ;;  %vm878_vm0 = vweird.f32 %v820_v63 }
 0x1db   :  { %v861_v1 = vsel %vm860_vm11, %v1304_v41, %v857_v2  ;;  %v864_v4 = vmul.f32 %v1306_v61, %v863_v50 }
 0x1dc   :  { %v994_v6 = vmul.f32 %v861_v1, %v1612_v9 }
 0x1dd   :  { %v865_v7 = vmul.f32 0.5, %v864_v4 }
 0x1de   :  { %v1010_v3 = vmax.f32 %v994_v6, 0.0 }
 0x1df   :  { %v866_v8 = vsub.f32 1.5, %v865_v7  ;;  %v795_v10 = vpop.xlane.xlu2 %794 }
 0x1e0   :  { %v1308_v52 = vpop.eup %1307  ;;  %1026 = vst [vmem:[#allocation9 + $0x10] sm:$0xff] %v1010_v3  ;;  %v821_v11 = vmax.f32 %v795_v10, 1e-24 }
 0x1e1   :  { %v867_v12 = vmul.f32 %v1306_v61, %v866_v8  ;;  %v873_v14 = vmul.f32 %v1308_v52, %v820_v63  ;;  %vm879_vm15 = vweird.f32 %v1308_v52 }
 0x1e2   :  { %1309 = vrsqrt.f32 %v821_v11  ;;  %vm880_vm1 = vmor %vm878_vm0, %vm879_vm15  ;;  %vm888_vm3 = vweird.f32 %v821_v11 }
 0x1e3   :  { %v871_v15 = vsel %vm870_vm14, %v1306_v61, %v867_v12  ;;  %v874_v16 = vmul.f32 %v1308_v52, %v873_v14 }
 0x1e4   :  { %v995_v17 = vmul.f32 %v871_v15, %v1617_v13 }
 0x1e5   :  { %v875_v19 = vmul.f32 0.5, %v874_v16 }
 0x1e6   :  { %v1011_v56 = vmax.f32 %v995_v17, 0.0 }
 0x1e7   :  { %v876_v9 = vsub.f32 1.5, %v875_v19  ;;  %v797_v20 = vpop.xlane.xlu0 %796 }
 0x1e8   :  { %v1310_v21 = vpop.eup %1309  ;;  %1027 = vst [vmem:[#allocation9 + $0x18] sm:$0xff] %v1011_v56  ;;  %v822_v22 = vmax.f32 %v797_v20, 1e-24 }
 0x1e9   :  { %v877_v24 = vmul.f32 %v1308_v52, %v876_v9  ;;  %v883_v25 = vmul.f32 %v1310_v21, %v821_v11  ;;  %vm889_vm2 = vweird.f32 %v1310_v21 }
 0x1ea   :  { %1311 = vrsqrt.f32 %v822_v22  ;;  %vm890_vm4 = vmor %vm888_vm3, %vm889_vm2  ;;  %vm898_vm6 = vweird.f32 %v822_v22 }
 0x1eb   :  { %v881_v26 = vsel %vm880_vm1, %v1308_v52, %v877_v24  ;;  %v884_v27 = vmul.f32 %v1310_v21, %v883_v25 }
 0x1ec   :  { %v996_v29 = vmul.f32 %v881_v26, %v1622_v18 }
 0x1ed   :  { %v885_v30 = vmul.f32 0.5, %v884_v27 }
 0x1ee   :  { %v1012_v31 = vmax.f32 %v996_v29, 0.0 }
 0x1ef   :  { %v886_v13 = vsub.f32 1.5, %v885_v30  ;;  %v799_v32 = vpop.xlane.xlu1 %798 }
 0x1f0   :  { %v1312_v33 = vpop.eup %1311  ;;  %1028 = vst [vmem:[#allocation9 + $0x20] sm:$0xff] %v1012_v31  ;;  %v823_v35 = vmax.f32 %v799_v32, 1e-24 }
 0x1f1   :  { %v887_v36 = vmul.f32 %v1310_v21, %v886_v13  ;;  %v893_v37 = vmul.f32 %v1312_v33, %v822_v22  ;;  %vm899_vm5 = vweird.f32 %v1312_v33 }
 0x1f2   :  { %1313 = vrsqrt.f32 %v823_v35  ;;  %vm900_vm7 = vmor %vm898_vm6, %vm899_vm5  ;;  %vm908_vm9 = vweird.f32 %v823_v35 }
 0x1f3   :  { %v891_v38 = vsel %vm890_vm4, %v1310_v21, %v887_v36  ;;  %v894_v40 = vmul.f32 %v1312_v33, %v893_v37 }
 0x1f4   :  { %v997_v41 = vmul.f32 %v891_v38, %v1627_v23 }
 0x1f5   :  { %v895_v42 = vmul.f32 0.5, %v894_v40 }
 0x1f6   :  { %v1013_v43 = vmax.f32 %v997_v41, 0.0 }
 0x1f7   :  { %v896_v18 = vsub.f32 1.5, %v895_v42  ;;  %v801_v44 = vpop.xlane.xlu2 %800 }
 0x1f8   :  { %v1314_v46 = vpop.eup %1313  ;;  %1029 = vst [vmem:[#allocation9 + $0x28] sm:$0xff] %v1013_v43  ;;  %v824_v47 = vmax.f32 %v801_v44, 1e-24 }
 0x1f9   :  { %v897_v59 = vmul.f32 %v1312_v33, %v896_v18  ;;  %v903_v48 = vmul.f32 %v1314_v46, %v823_v35  ;;  %vm909_vm8 = vweird.f32 %v1314_v46 }
 0x1fa   :  { %1315 = vrsqrt.f32 %v824_v47  ;;  %vm910_vm10 = vmor %vm908_vm9, %vm909_vm8  ;;  %vm918_vm12 = vweird.f32 %v824_v47 }
 0x1fb   :  { %v901_v49 = vsel %vm900_vm7, %v1312_v33, %v897_v59  ;;  %v904_v53 = vmul.f32 %v1314_v46, %v903_v48 }
 0x1fc   :  { %v998_v57 = vmul.f32 %v901_v49, %v1632_v28 }
 0x1fd   :  { %v905_v58 = vmul.f32 0.5, %v904_v53 }
 0x1fe   :  { %v1014_v54 = vmax.f32 %v998_v57, 0.0 }
 0x1ff   :  { %v906_v23 = vsub.f32 1.5, %v905_v58  ;;  %v803_v60 = vpop.xlane.xlu0 %802 }
 0x200   :  { %v1316_v61 = vpop.eup %1315  ;;  %1030 = vst [vmem:[#allocation9 + $0x30] sm:$0xff] %v1014_v54  ;;  %v825_v63 = vmax.f32 %v803_v60, 1e-24 }
 0x201   :  { %v907_v2 = vmul.f32 %v1314_v46, %v906_v23  ;;  %v913_v50 = vmul.f32 %v1316_v61, %v824_v47  ;;  %vm919_vm11 = vweird.f32 %v1316_v61 }
 0x202   :  { %1317 = vrsqrt.f32 %v825_v63  ;;  %vm920_vm13 = vmor %vm918_vm12, %vm919_vm11  ;;  %vm928_vm15 = vweird.f32 %v825_v63 }
 0x203   :  { %v911_v1 = vsel %vm910_vm10, %v1314_v46, %v907_v2  ;;  %v914_v4 = vmul.f32 %v1316_v61, %v913_v50 }
 0x204   :  { %v999_v6 = vmul.f32 %v911_v1, %v1637_v34 }
 0x205   :  { %v915_v7 = vmul.f32 0.5, %v914_v4 }
 0x206   :  { %v1015_v3 = vmax.f32 %v999_v6, 0.0 }
 0x207   :  { %v916_v28 = vsub.f32 1.5, %v915_v7  ;;  %v815_v8 = vpop.xlane.xlu0 %814  ;;  %v805_v10 = vpop.xlane.xlu1 %804 }
 0x208   :  { %v1318_v52 = vpop.eup %1317  ;;  %1031 = vst [vmem:[#allocation9 + $0x38] sm:$0xff] %v1015_v3  ;;  %v831_v11 = vmax.f32 %v815_v8, 1e-24  ;;  %v826_v12 = vmax.f32 %v805_v10, 1e-24 }
 0x209   :  { %v917_v14 = vmul.f32 %v1316_v61, %v916_v28  ;;  %v923_v15 = vmul.f32 %v1318_v52, %v825_v63  ;;  %vm929_vm14 = vweird.f32 %v1318_v52 }
 0x20a   :  { %1319 = vrsqrt.f32 %v831_v11  ;;  %vm930_vm0 = vmor %vm928_vm15, %vm929_vm14  ;;  %vm988_vm3 = vweird.f32 %v831_v11  ;;  %vm938_vm5 = vweird.f32 %v826_v12 }
 0x20b   :  { %v921_v16 = vsel %vm920_vm13, %v1316_v61, %v917_v14  ;;  %v924_v17 = vmul.f32 %v1318_v52, %v923_v15  ;;  %1321 = vrsqrt.f32 %v826_v12 }
 0x20c   :  { %v1000_v34 = vmul.f32 %v921_v16, %v1642_v39 }
 0x20d   :  { %v925_v19 = vmul.f32 0.5, %v924_v17 }
 0x20e   :  { %v1016_v56 = vmax.f32 %v1000_v34, 0.0 }
 0x20f   :  { %v926_v9 = vsub.f32 1.5, %v925_v19  ;;  %v807_v20 = vpop.xlane.xlu2 %806  ;;  %v811_v21 = vpop.xlane.xlu1 %810 }
 0x210   :  { %v1320_v22 = vpop.eup %1319  ;;  %1032 = vst [vmem:[#allocation9 + $0x40] sm:$0xff] %v1016_v56  ;;  %v827_v24 = vmax.f32 %v807_v20, 1e-24  ;;  %v829_v25 = vmax.f32 %v811_v21, 1e-24 }
 0x211   :  { %v1322_v26 = vpop.eup %1321  ;;  %v927_v27 = vmul.f32 %v1318_v52, %v926_v9  ;;  %v983_v29 = vmul.f32 %v1320_v22, %v831_v11  ;;  %vm989_vm1 = vweird.f32 %v1320_v22 }
 0x212   :  { %v933_v30 = vmul.f32 %v1322_v26, %v826_v12  ;;  %1323 = vrsqrt.f32 %v827_v24  ;;  %vm939_vm2 = vweird.f32 %v1322_v26  ;;  %vm990_vm4 = vmor %vm988_vm3, %vm989_vm1  ;;  %vm948_vm9 = vweird.f32 %v827_v24 }
 0x213   :  { %v931_v31 = vsel %vm930_vm0, %v1318_v52, %v927_v27  ;;  %v984_v13 = vmul.f32 %v1320_v22, %v983_v29  ;;  %1325 = vrsqrt.f32 %v829_v25  ;;  %vm940_vm6 = vmor %vm938_vm5, %vm939_vm2  ;;  %vm968_vm11 = vweird.f32 %v829_v25 }
 0x214   :  { %v1001_v39 = vmul.f32 %v931_v31, %v1647_v45  ;;  %v934_v32 = vmul.f32 %v1322_v26, %v933_v30 }
 0x215   :  { %v985_v33 = vmul.f32 0.5, %v984_v13 }
 0x216   :  { %v1017_v35 = vmax.f32 %v1001_v39, 0.0  ;;  %v935_v36 = vmul.f32 0.5, %v934_v32 }
 0x217   :  { %v986_v37 = vsub.f32 1.5, %v985_v33  ;;  %v813_v38 = vpop.xlane.xlu2 %812 }
 0x218   :  { %v1324_v40 = vpop.eup %1323  ;;  %1033 = vst [vmem:[#allocation9 + $0x48] sm:$0xff] %v1017_v35  ;;  %v936_v41 = vsub.f32 1.5, %v935_v36  ;;  %v830_v42 = vmax.f32 %v813_v38, 1e-24 }
 0x219   :  { %v1326_v43 = vpop.eup %1325  ;;  %v987_v18 = vmul.f32 %v1320_v22, %v986_v37  ;;  %v943_v44 = vmul.f32 %v1324_v40, %v827_v24  ;;  %vm949_vm7 = vweird.f32 %v1324_v40 }
 0x21a   :  { %v937_v46 = vmul.f32 %v1322_v26, %v936_v41  ;;  %v963_v45 = vmul.f32 %v1326_v43, %v829_v25  ;;  %1327 = vrsqrt.f32 %v830_v42  ;;  %vm969_vm8 = vweird.f32 %v1326_v43  ;;  %vm950_vm10 = vmor %vm948_vm9, %vm949_vm7 }
 0x21b   :  { %v991_v47 = vsel %vm990_vm4, %v1320_v22, %v987_v18  ;;  %v944_v59 = vmul.f32 %v1324_v40, %v943_v44  ;;  %vm970_vm12 = vmor %vm968_vm11, %vm969_vm8  ;;  %vm978_vm14 = vweird.f32 %v830_v42 }
 0x21c   :  { %v1007_v48 = vmul.f32 %v991_v47, %v1653_v51  ;;  %v941_v49 = vsel %vm940_vm6, %v1322_v26, %v937_v46  ;;  %v964_v53 = vmul.f32 %v1326_v43, %v963_v45 }
 0x21d   :  { %v1002_v57 = vmul.f32 %v941_v49, %v1656_v55  ;;  %v945_v58 = vmul.f32 0.5, %v944_v59 }
 0x21e   :  { %v1023_v54 = vmax.f32 %v1007_v48, 0.0  ;;  %v965_v23 = vmul.f32 0.5, %v964_v53 }
 0x21f   :  { %v1018_v60 = vmax.f32 %v1002_v57, 0.0  ;;  %v946_v61 = vsub.f32 1.5, %v945_v58 }
 0x220   :  { %v1328_v63 = vpop.eup %1327  ;;  %1039 = vst [vmem:[#allocation9 + $0x78] sm:$0xff] %v1023_v54  ;;  %v966_v2 = vsub.f32 1.5, %v965_v23 }
 0x221   :  { %1034 = vst [vmem:[#allocation9 + $0x50] sm:$0xff] %v1018_v60  ;;  %v947_v50 = vmul.f32 %v1324_v40, %v946_v61  ;;  %v973_v1 = vmul.f32 %v1328_v63, %v830_v42  ;;  %vm979_vm13 = vweird.f32 %v1328_v63 }
 0x222   :  { %v967_v51 = vmul.f32 %v1326_v43, %v966_v2  ;;  %vm980_vm15 = vmor %vm978_vm14, %vm979_vm13 }
 0x223   :  { %v951_v4 = vsel %vm950_vm10, %v1324_v40, %v947_v50  ;;  %v974_v55 = vmul.f32 %v1328_v63, %v973_v1 }
 0x224   :  { %v1003_v6 = vmul.f32 %v951_v4, %v1667_v0  ;;  %v971_v7 = vsel %vm970_vm12, %v1326_v43, %v967_v51 }
 0x225   :  { %v1005_v3 = vmul.f32 %v971_v7, %v1664_v62  ;;  %v975_v28 = vmul.f32 0.5, %v974_v55 }
 0x226   :  { %v1019_v8 = vmax.f32 %v1003_v6, 0.0 }
 0x227   :  { %v1021_v10 = vmax.f32 %v1005_v3, 0.0  ;;  %v976_v52 = vsub.f32 1.5, %v975_v28 }
 0x228   :  { %1035 = vst [vmem:[#allocation9 + $0x58] sm:$0xff] %v1019_v8 }
 0x229   :  { %1037 = vst [vmem:[#allocation9 + $0x68] sm:$0xff] %v1021_v10  ;;  %v977_v11 = vmul.f32 %v1328_v63, %v976_v52 }
 0x22b   :  { %v981_v0 = vsel %vm980_vm15, %v1328_v63, %v977_v11 }
 0x22c   :  { %v1006_v12 = vmul.f32 %v981_v0, %v1675_v5 }
 0x22e   :  { %v1022_v62 = vmax.f32 %v1006_v12, 0.0 }
 0x230   :  { %1038 = vst [vmem:[#allocation9 + $0x70] sm:$0xff] %v1022_v62 }
 0x231   :  { %1052 = dma.vmem_to_hbm [thread:$0]  %s1045_s26, 2048, %s1047_s29, [#allocation5], %s1438_s30, %s1438_s30, %s1439_s1  }
 0x232   :  { %1429 = dma.done.wait [#allocation5], 2048  }
 0x233   :  { %1430 = vsyncadd [#allocation5], 4294965248 }
 0x234   :  { %1057 = vsyncpa [#allocation4], 1 }
 0x235   :  { %1058 = vsyncpa [#allocation7], 1 }
 0x236   :  { %1059 = vsyncpa [#allocation5], 1 }

</bundles_post_ra>
